<compile_context>
chip_gen: v7x
topology: tpu7x:2x2x1
jax: 0.10.0
libtpu: 0.0.40
codegen_flags: <defaults>
</compile_context>

<pallas_src>
import functools
import math

import jax
import jax.numpy as jnp
from jax.experimental import pallas as pl
from jax.experimental.pallas import tpu as pltpu


# ---------------------------------------------------------------------------
# Pallas kernels
# ---------------------------------------------------------------------------
def _stats_kernel(x_ref, w1_ref, b1_ref, w2_ref, s1_ref, s2_ref, *, tm, hw):
    """Pass A: conv1 + lrelu + conv2; accumulate per-channel sum / sum-of-squares.

    Grid = (B, num_tiles); accumulators are per-image (block index depends only
    on the batch axis), tail pixels of the last tile are masked out.
    """
    t = pl.program_id(1)

    @pl.when(t == 0)
    def _():
        s1_ref[...] = jnp.zeros_like(s1_ref)
        s2_ref[...] = jnp.zeros_like(s2_ref)

    x = x_ref[...].astype(jnp.bfloat16)                                   # (Cin, TM)
    h1 = jnp.dot(w1_ref[...], x, preferred_element_type=jnp.float32)      # (ndf, TM)
    h1 = h1 + b1_ref[...]
    h1 = jnp.maximum(h1, 0.2 * h1)                                        # LeakyReLU(0.2)
    h2 = jnp.dot(w2_ref[...], h1.astype(jnp.bfloat16),
                 preferred_element_type=jnp.float32)                      # (C2, TM)

    # Mask padded tail columns (their input is uninitialized) so they do not
    # pollute the batch statistics.  jnp.where also stops NaN propagation.
    col = t * tm + jax.lax.broadcasted_iota(jnp.int32, (1, tm), 1)        # (1, TM)
    h2 = jnp.where(col < hw, h2, 0.0)

    s1_ref[...] += jnp.sum(h2, axis=1, keepdims=True)[None]               # (1, C2, 1)
    s2_ref[...] += jnp.sum(h2 * h2, axis=1, keepdims=True)[None]


def _fwd_kernel(x_ref, w1_ref, b1_ref, w2_ref, shift_ref, w3_ref, o_ref):
    """Pass B: conv1+lrelu -> conv2 (BN scale pre-folded) + shift + lrelu -> conv3.

    conv3 is done on the VPU (w3 column multiply + cross-sublane sum) instead
    of a wasteful M=1 MXU matmul.
    """
    x = x_ref[...].astype(jnp.bfloat16)                                   # (Cin, TM)
    h1 = jnp.dot(w1_ref[...], x, preferred_element_type=jnp.float32)      # (ndf, TM)
    h1 = h1 + b1_ref[...]
    h1 = jnp.maximum(h1, 0.2 * h1)
    h2 = jnp.dot(w2_ref[...], h1.astype(jnp.bfloat16),
                 preferred_element_type=jnp.float32)                      # (C2, TM)
    h2 = h2 + shift_ref[...]                                              # BN shift only
    h2 = jnp.maximum(h2, 0.2 * h2)
    y = jnp.sum(h2 * w3_ref[...], axis=0, keepdims=True)                  # (1, TM) f32
    o_ref[...] = y[None]                                                  # (1, 1, TM)


# ---------------------------------------------------------------------------
# Wrapper
# ---------------------------------------------------------------------------
def pixel_discriminator_forward(params, x_nchw, *, eps=1e-5, tile=4096):
    """x_nchw: (B, Cin, H, W) float32.  Returns (B, 1, H, W) float32."""
    w1, b1, w2 = params["w1"], params["b1"], params["w2"]
    gamma, beta, w3 = params["gamma"], params["beta"], params["w3"]

    B, Cin, H, W = x_nchw.shape
    ndf = w1.shape[0]
    C2 = w2.shape[0]
    HW = H * W
    N = B * HW

    # (B, Cin, H*W): channel-major / pixel-minor per image; pure reshape (no copy).
    x3 = x_nchw.reshape(B, Cin, HW)

    # Pixel tile: large (amortizes ~0.35us/step grid overhead + MXU drain),
    # multiple of 128 lanes, capped by the image size.
    TM = max(128, min(tile, HW))
    TM = ((TM + 127) // 128) * 128
    num_tiles = pl.cdiv(HW, TM)

    w1_bf = w1.astype(jnp.bfloat16)
    w2_bf = w2.astype(jnp.bfloat16)
    b1_col = b1.reshape(ndf, 1).astype(jnp.float32)

    x_spec = pl.BlockSpec((pl.Squeezed(), Cin, TM), lambda b, t: (b, 0, t))
    w1_spec = pl.BlockSpec((ndf, Cin), lambda b, t: (0, 0))    # resident across tiles
    b1_spec = pl.BlockSpec((ndf, 1), lambda b, t: (0, 0))
    w2_spec = pl.BlockSpec((C2, ndf), lambda b, t: (0, 0))
    col_spec = pl.BlockSpec((C2, 1), lambda b, t: (0, 0))

    # Plenty for the few-MB working set at TM<=8192; safe on v5e (16 MiB scoped
    # default raised) and well under v7x's 64 MiB physical VMEM.
    vmem_limit = 48 * 1024 * 1024

    flops_pair = 2 * B * num_tiles * TM * (Cin * ndf + ndf * C2)
    w_bytes = (w1_bf.size + w2_bf.size) * 2 + b1_col.size * 4
    x_bytes = B * Cin * HW * 4

    # --- pass A: batch-norm moments (per-image partial accumulators) --------
    s1, s2 = pl.pallas_call(
        functools.partial(_stats_kernel, tm=TM, hw=HW),
        out_shape=(jax.ShapeDtypeStruct((B, C2, 1), jnp.float32),
                   jax.ShapeDtypeStruct((B, C2, 1), jnp.float32)),
        grid=(B, num_tiles),
        in_specs=[x_spec, w1_spec, b1_spec, w2_spec],
        out_specs=(pl.BlockSpec((1, C2, 1), lambda b, t: (b, 0, 0)),
                   pl.BlockSpec((1, C2, 1), lambda b, t: (b, 0, 0))),
        compiler_params=pltpu.CompilerParams(
            dimension_semantics=("parallel", "arbitrary"),
            vmem_limit_bytes=vmem_limit),
        cost_estimate=pl.CostEstimate(
            flops=flops_pair, transcendentals=0,
            bytes_accessed=x_bytes + w_bytes + 2 * B * C2 * 4),
    )(x3, w1_bf, b1_col, w2_bf)

    # Fold BN (training-mode batch stats, biased variance) into scale/shift.
    s1 = jnp.sum(s1[:, :, 0], axis=0)                  # (C2,)
    s2 = jnp.sum(s2[:, :, 0], axis=0)
    mean = s1 / N
    var = s2 / N - mean * mean
    rstd = jax.lax.rsqrt(var + eps)
    scale = gamma * rstd                               # (C2,)
    shift = (beta - mean * scale).reshape(C2, 1).astype(jnp.float32)

    # Fold the multiplicative BN scale directly into conv2's weights.
    w2_fold = (w2 * scale[:, None]).astype(jnp.bfloat16)
    w3_col = w3.reshape(C2, 1).astype(jnp.float32)     # (1, C2) -> column for VPU conv3

    # --- pass B: fused forward ----------------------------------------------
    y = pl.pallas_call(
        _fwd_kernel,
        out_shape=jax.ShapeDtypeStruct((B, 1, HW), jnp.float32),
        grid=(B, num_tiles),
        in_specs=[x_spec, w1_spec, b1_spec, w2_spec, col_spec, col_spec],
        out_specs=pl.BlockSpec((1, 1, TM), lambda b, t: (b, 0, t)),
        compiler_params=pltpu.CompilerParams(
            dimension_semantics=("parallel", "parallel"),
            vmem_limit_bytes=vmem_limit),
        cost_estimate=pl.CostEstimate(
            flops=flops_pair + 2 * B * num_tiles * TM * C2, transcendentals=0,
            bytes_accessed=x_bytes + w_bytes + B * HW * 4),
    )(x3, w1_bf, b1_col, w2_fold, shift, w3_col)

    return y.reshape(B, 1, H, W)


# ---------------------------------------------------------------------------
# Parameters (deterministic, synthetic; gamma=1 / beta=0 match torch defaults)
# ---------------------------------------------------------------------------
def init_params(key, input_nc, ndf):
    k1, k2, k3, k4 = jax.random.split(key, 4)
    w1 = jax.random.normal(k1, (ndf, input_nc), jnp.float32) / math.sqrt(input_nc)
    b1 = jax.random.normal(k2, (ndf,), jnp.float32) * 0.01
    w2 = jax.random.normal(k3, (2 * ndf, ndf), jnp.float32) / math.sqrt(ndf)
    w3 = jax.random.normal(k4, (1, 2 * ndf), jnp.float32) / math.sqrt(2 * ndf)
    gamma = jnp.ones((2 * ndf,), jnp.float32)
    beta = jnp.zeros((2 * ndf,), jnp.float32)
    return dict(w1=w1, b1=b1, w2=w2, gamma=gamma, beta=beta, w3=w3)


# ---------------------------------------------------------------------------
# Pure-JAX reference (same bf16 matmul precision) for a sanity check
# ---------------------------------------------------------------------------
def _reference_forward(params, x_nchw, eps=1e-5):
    B, Cin, H, W = x_nchw.shape
    xm = jnp.transpose(x_nchw, (1, 0, 2, 3)).reshape(Cin, -1).astype(jnp.bfloat16)
    w1 = params["w1"].astype(jnp.bfloat16)
    w2 = params["w2"].astype(jnp.bfloat16)
    w3 = params["w3"].astype(jnp.bfloat16)
    h1 = jnp.dot(w1, xm, preferred_element_type=jnp.float32) + params["b1"][:, None]
    h1 = jnp.where(h1 >= 0, h1, 0.2 * h1)
    h2 = jnp.dot(w2, h1.astype(jnp.bfloat16), preferred_element_type=jnp.float32)
    mean = jnp.mean(h2, axis=1, keepdims=True)
    var = jnp.mean(h2 * h2, axis=1, keepdims=True) - mean * mean
    h2n = (h2 - mean) * jax.lax.rsqrt(var + eps)
    h2n = h2n * params["gamma"][:, None] + params["beta"][:, None]
    h2n = jnp.where(h2n >= 0, h2n, 0.2 * h2n)
    y = jnp.dot(w3, h2n.astype(jnp.bfloat16), preferred_element_type=jnp.float32)
    return y[0].reshape(B, H, W)[:, None, :, :]


# ---------------------------------------------------------------------------
if __name__ == "__main__":
    INPUT_NC, NDF = 4, 16          # small stand-in for (3, 64)
    B, H, W = 2, 16, 16

    key = jax.random.PRNGKey(0)
    kx, kp = jax.random.split(key)
    x = jax.random.normal(kx, (B, INPUT_NC, H, W), jnp.float32)   # NCHW like PyTorch
    params = init_params(kp, INPUT_NC, NDF)

    fwd = jax.jit(pixel_discriminator_forward)
    out = fwd(params, x)
    jax.block_until_ready(out)

    assert out.shape == (B, 1, H, W), out.shape
    assert bool(jnp.all(jnp.isfinite(out)))

    ref = _reference_forward(params, x)
    max_err = float(jnp.max(jnp.abs(out - ref)))
    assert max_err < 5e-2, f"mismatch vs reference: {max_err}"

    print("KERNEL_OK")
</pallas_src>

<mosaic_0001>
module attributes {stable_mosaic.version = 11 : i64} {
  func.func @_fwd_kernel(%arg0: i32, %arg1: i32, %arg2: memref<1x4x256xf32, #tpu.memory_space<vmem>>, %arg3: memref<16x4xbf16, #tpu.memory_space<vmem>>, %arg4: memref<16x1xf32, #tpu.memory_space<vmem>>, %arg5: memref<32x16xbf16, #tpu.memory_space<vmem>>, %arg6: memref<32x1xf32, #tpu.memory_space<vmem>>, %arg7: memref<32x1xf32, #tpu.memory_space<vmem>>, %arg8: memref<1x1x256xf32, #tpu.memory_space<vmem>>) attributes {dimension_semantics = [#tpu.dimension_semantics<parallel>, #tpu.dimension_semantics<parallel>], iteration_bounds = array<i64: 2, 1>, scalar_prefetch = 0 : i64, scratch_operands = 0 : i64, tpu.core_type = #tpu.core_type<tc>, window_params = [{transform_indices = @transform_0, window_bounds = array<i64: 1, 4, 256>}, {pipeline_mode = #tpu.pipeline_mode<synchronous>, transform_indices = @transform_1, window_bounds = array<i64: 16, 4>}, {pipeline_mode = #tpu.pipeline_mode<synchronous>, transform_indices = @transform_2, window_bounds = array<i64: 16, 1>}, {pipeline_mode = #tpu.pipeline_mode<synchronous>, transform_indices = @transform_3, window_bounds = array<i64: 32, 16>}, {pipeline_mode = #tpu.pipeline_mode<synchronous>, transform_indices = @transform_4, window_bounds = array<i64: 32, 1>}, {pipeline_mode = #tpu.pipeline_mode<synchronous>, transform_indices = @transform_5, window_bounds = array<i64: 32, 1>}, {transform_indices = @transform_6, window_bounds = array<i64: 1, 1, 256>}]} {
    %c0 = arith.constant 0 : index
    %c0_0 = arith.constant 0 : index
    %c0_1 = arith.constant 0 : index
    %0 = vector.load %arg2[%c0, %c0_0, %c0_1] : memref<1x4x256xf32, #tpu.memory_space<vmem>>, vector<1x4x256xf32>
    %1 = vector.shape_cast %0 : vector<1x4x256xf32> to vector<4x256xf32>
    %2 = arith.truncf %1 : vector<4x256xf32> to vector<4x256xbf16>
    %c0_2 = arith.constant 0 : index
    %c0_3 = arith.constant 0 : index
    %3 = vector.load %arg3[%c0_2, %c0_3] : memref<16x4xbf16, #tpu.memory_space<vmem>>, vector<16x4xbf16>
    %cst = arith.constant dense<0.000000e+00> : vector<16x256xf32>
    %4 = tpu.matmul %3, %2, %cst {dimension_numbers = #tpu.dot_dimension_numbers<[1], [0], [0], [1], [0, 0, 1, 1], [], []>} : vector<16x4xbf16>, vector<4x256xbf16>, vector<16x256xf32> -> vector<16x256xf32>
    %c0_4 = arith.constant 0 : index
    %c0_5 = arith.constant 0 : index
    %5 = vector.load %arg4[%c0_4, %c0_5] : memref<16x1xf32, #tpu.memory_space<vmem>>, vector<16x1xf32>
    %6 = vector.broadcast %5 : vector<16x1xf32> to vector<16x256xf32>
    %7 = arith.addf %4, %6 : vector<16x256xf32>
    %cst_6 = arith.constant 2.000000e-01 : f32
    %8 = vector.broadcast %cst_6 : f32 to vector<16x256xf32>
    %9 = arith.mulf %8, %7 : vector<16x256xf32>
    %10 = arith.maximumf %7, %9 : vector<16x256xf32>
    %c0_7 = arith.constant 0 : index
    %c0_8 = arith.constant 0 : index
    %11 = vector.load %arg5[%c0_7, %c0_8] : memref<32x16xbf16, #tpu.memory_space<vmem>>, vector<32x16xbf16>
    %12 = arith.truncf %10 : vector<16x256xf32> to vector<16x256xbf16>
    %cst_9 = arith.constant dense<0.000000e+00> : vector<32x256xf32>
    %13 = tpu.matmul %11, %12, %cst_9 {dimension_numbers = #tpu.dot_dimension_numbers<[1], [0], [0], [1], [0, 0, 1, 1], [], []>} : vector<32x16xbf16>, vector<16x256xbf16>, vector<32x256xf32> -> vector<32x256xf32>
    %c0_10 = arith.constant 0 : index
    %c0_11 = arith.constant 0 : index
    %14 = vector.load %arg6[%c0_10, %c0_11] : memref<32x1xf32, #tpu.memory_space<vmem>>, vector<32x1xf32>
    %15 = vector.broadcast %14 : vector<32x1xf32> to vector<32x256xf32>
    %16 = arith.addf %13, %15 : vector<32x256xf32>
    %cst_12 = arith.constant 2.000000e-01 : f32
    %17 = vector.broadcast %cst_12 : f32 to vector<32x256xf32>
    %18 = arith.mulf %17, %16 : vector<32x256xf32>
    %19 = arith.maximumf %16, %18 : vector<32x256xf32>
    %c0_13 = arith.constant 0 : index
    %c0_14 = arith.constant 0 : index
    %20 = vector.load %arg7[%c0_13, %c0_14] : memref<32x1xf32, #tpu.memory_space<vmem>>, vector<32x1xf32>
    %21 = vector.broadcast %20 : vector<32x1xf32> to vector<32x256xf32>
    %22 = arith.mulf %19, %21 : vector<32x256xf32>
    %cst_15 = arith.constant dense<0.000000e+00> : vector<256xf32>
    %23 = vector.multi_reduction <add>, %22, %cst_15 [0] : vector<32x256xf32> to vector<256xf32>
    %24 = vector.shape_cast %23 : vector<256xf32> to vector<1x256xf32>
    %25 = vector.shape_cast %24 : vector<1x256xf32> to vector<1x1x256xf32>
    %c0_16 = arith.constant 0 : index
    %c0_17 = arith.constant 0 : index
    %c0_18 = arith.constant 0 : index
    %26 = vector.load %arg8[%c0_16, %c0_17, %c0_18] : memref<1x1x256xf32, #tpu.memory_space<vmem>>, vector<1x1x256xf32>
    tpu.vector_store %arg8[%c0_16, %c0_17, %c0_18], %25 {strides = array<i32>} : memref<1x1x256xf32, #tpu.memory_space<vmem>>, vector<1x1x256xf32>,
    return
  }
  func.func @transform_0(%arg0: i32, %arg1: i32) -> (i32, i32, i32) {
    %c0_i32 = arith.constant 0 : i32
    %c0_i32_0 = arith.constant 0 : i32
    return %arg0, %c0_i32, %arg1 : i32, i32, i32
  }
  func.func @transform_1(%arg0: i32, %arg1: i32) -> (i32, i32) {
    %c0_i32 = arith.constant 0 : i32
    %c0_i32_0 = arith.constant 0 : i32
    %c0_i32_1 = arith.constant 0 : i32
    return %c0_i32, %c0_i32_0 : i32, i32
  }
  func.func @transform_2(%arg0: i32, %arg1: i32) -> (i32, i32) {
    %c0_i32 = arith.constant 0 : i32
    %c0_i32_0 = arith.constant 0 : i32
    %c0_i32_1 = arith.constant 0 : i32
    return %c0_i32, %c0_i32_0 : i32, i32
  }
  func.func @transform_3(%arg0: i32, %arg1: i32) -> (i32, i32) {
    %c0_i32 = arith.constant 0 : i32
    %c0_i32_0 = arith.constant 0 : i32
    %c0_i32_1 = arith.constant 0 : i32
    return %c0_i32, %c0_i32_0 : i32, i32
  }
  func.func @transform_4(%arg0: i32, %arg1: i32) -> (i32, i32) {
    %c0_i32 = arith.constant 0 : i32
    %c0_i32_0 = arith.constant 0 : i32
    %c0_i32_1 = arith.constant 0 : i32
    return %c0_i32, %c0_i32_0 : i32, i32
  }
  func.func @transform_5(%arg0: i32, %arg1: i32) -> (i32, i32) {
    %c0_i32 = arith.constant 0 : i32
    %c0_i32_0 = arith.constant 0 : i32
    %c0_i32_1 = arith.constant 0 : i32
    return %c0_i32, %c0_i32_0 : i32, i32
  }
  func.func @transform_6(%arg0: i32, %arg1: i32) -> (i32, i32, i32) {
    %c0_i32 = arith.constant 0 : i32
    %c0_i32_0 = arith.constant 0 : i32
    return %arg0, %c0_i32, %arg1 : i32, i32, i32
  }
}

module attributes {stable_mosaic.version = 11 : i64} {
  func.func @_stats_kernel(%arg0: i32, %arg1: i32, %arg2: memref<1x4x256xf32, #tpu.memory_space<vmem>>, %arg3: memref<16x4xbf16, #tpu.memory_space<vmem>>, %arg4: memref<16x1xf32, #tpu.memory_space<vmem>>, %arg5: memref<32x16xbf16, #tpu.memory_space<vmem>>, %arg6: memref<1x32x1xf32, #tpu.memory_space<vmem>>, %arg7: memref<1x32x1xf32, #tpu.memory_space<vmem>>) attributes {dimension_semantics = [#tpu.dimension_semantics<parallel>, #tpu.dimension_semantics<arbitrary>], iteration_bounds = array<i64: 2, 1>, scalar_prefetch = 0 : i64, scratch_operands = 0 : i64, tpu.core_type = #tpu.core_type<tc>, window_params = [{transform_indices = @transform_0, window_bounds = array<i64: 1, 4, 256>}, {pipeline_mode = #tpu.pipeline_mode<synchronous>, transform_indices = @transform_1, window_bounds = array<i64: 16, 4>}, {pipeline_mode = #tpu.pipeline_mode<synchronous>, transform_indices = @transform_2, window_bounds = array<i64: 16, 1>}, {pipeline_mode = #tpu.pipeline_mode<synchronous>, transform_indices = @transform_3, window_bounds = array<i64: 32, 16>}, {transform_indices = @transform_4, window_bounds = array<i64: 1, 32, 1>}, {transform_indices = @transform_5, window_bounds = array<i64: 1, 32, 1>}]} {
    %c0_i32 = arith.constant 0 : i32
    %0 = arith.cmpi eq, %arg1, %c0_i32 : i32
    %1 = arith.extui %0 : i1 to i32
    %c0_i32_0 = arith.constant 0 : i32
    %2 = arith.cmpi ne, %1, %c0_i32_0 : i32
    scf.if %2 {
      %cst_27 = arith.constant 0.000000e+00 : f32
      %40 = vector.broadcast %cst_27 : f32 to vector<1x32x1xf32>
      %c0_28 = arith.constant 0 : index
      %c0_29 = arith.constant 0 : index
      %c0_30 = arith.constant 0 : index
      %41 = vector.load %arg6[%c0_28, %c0_29, %c0_30] : memref<1x32x1xf32, #tpu.memory_space<vmem>>, vector<1x32x1xf32>
      tpu.vector_store %arg6[%c0_28, %c0_29, %c0_30], %40 {strides = array<i32>} : memref<1x32x1xf32, #tpu.memory_space<vmem>>, vector<1x32x1xf32>,
      %cst_31 = arith.constant 0.000000e+00 : f32
      %42 = vector.broadcast %cst_31 : f32 to vector<1x32x1xf32>
      %c0_32 = arith.constant 0 : index
      %c0_33 = arith.constant 0 : index
      %c0_34 = arith.constant 0 : index
      %43 = vector.load %arg7[%c0_32, %c0_33, %c0_34] : memref<1x32x1xf32, #tpu.memory_space<vmem>>, vector<1x32x1xf32>
      tpu.vector_store %arg7[%c0_32, %c0_33, %c0_34], %42 {strides = array<i32>} : memref<1x32x1xf32, #tpu.memory_space<vmem>>, vector<1x32x1xf32>,
    } else {
    }
    %c0 = arith.constant 0 : index
    %c0_1 = arith.constant 0 : index
    %c0_2 = arith.constant 0 : index
    %3 = vector.load %arg2[%c0, %c0_1, %c0_2] : memref<1x4x256xf32, #tpu.memory_space<vmem>>, vector<1x4x256xf32>
    %4 = vector.shape_cast %3 : vector<1x4x256xf32> to vector<4x256xf32>
    %5 = arith.truncf %4 : vector<4x256xf32> to vector<4x256xbf16>
    %c0_3 = arith.constant 0 : index
    %c0_4 = arith.constant 0 : index
    %6 = vector.load %arg3[%c0_3, %c0_4] : memref<16x4xbf16, #tpu.memory_space<vmem>>, vector<16x4xbf16>
    %cst = arith.constant dense<0.000000e+00> : vector<16x256xf32>
    %7 = tpu.matmul %6, %5, %cst {dimension_numbers = #tpu.dot_dimension_numbers<[1], [0], [0], [1], [0, 0, 1, 1], [], []>} : vector<16x4xbf16>, vector<4x256xbf16>, vector<16x256xf32> -> vector<16x256xf32>
    %c0_5 = arith.constant 0 : index
    %c0_6 = arith.constant 0 : index
    %8 = vector.load %arg4[%c0_5, %c0_6] : memref<16x1xf32, #tpu.memory_space<vmem>>, vector<16x1xf32>
    %9 = vector.broadcast %8 : vector<16x1xf32> to vector<16x256xf32>
    %10 = arith.addf %7, %9 : vector<16x256xf32>
    %cst_7 = arith.constant 2.000000e-01 : f32
    %11 = vector.broadcast %cst_7 : f32 to vector<16x256xf32>
    %12 = arith.mulf %11, %10 : vector<16x256xf32>
    %13 = arith.maximumf %10, %12 : vector<16x256xf32>
    %c0_8 = arith.constant 0 : index
    %c0_9 = arith.constant 0 : index
    %14 = vector.load %arg5[%c0_8, %c0_9] : memref<32x16xbf16, #tpu.memory_space<vmem>>, vector<32x16xbf16>
    %15 = arith.truncf %13 : vector<16x256xf32> to vector<16x256xbf16>
    %cst_10 = arith.constant dense<0.000000e+00> : vector<32x256xf32>
    %16 = tpu.matmul %14, %15, %cst_10 {dimension_numbers = #tpu.dot_dimension_numbers<[1], [0], [0], [1], [0, 0, 1, 1], [], []>} : vector<32x16xbf16>, vector<16x256xbf16>, vector<32x256xf32> -> vector<32x256xf32>
    %c256_i32 = arith.constant 256 : i32
    %17 = arith.muli %arg1, %c256_i32 : i32
    %18 = tpu.iota {dimensions = array<i32: 1>} : vector<1x256xi32>
    %19 = vector.broadcast %17 : i32 to vector<1x256xi32>
    %20 = arith.addi %19, %18 : vector<1x256xi32>
    %c256_i32_11 = arith.constant 256 : i32
    %21 = vector.broadcast %c256_i32_11 : i32 to vector<1x256xi32>
    %22 = arith.cmpi slt, %20, %21 : vector<1x256xi32>
    %cst_12 = arith.constant 0.000000e+00 : f32
    %23 = vector.shape_cast %22 : vector<1x256xi1> to vector<1x256xi1>
    %24 = vector.broadcast %23 : vector<1x256xi1> to vector<32x256xi1>
    %25 = vector.broadcast %cst_12 : f32 to vector<32x256xf32>
    %26 = arith.select %24, %16, %25 : vector<32x256xi1>, vector<32x256xf32>
    %c0_13 = arith.constant 0 : index
    %c0_14 = arith.constant 0 : index
    %c0_15 = arith.constant 0 : index
    %27 = vector.load %arg6[%c0_13, %c0_14, %c0_15] : memref<1x32x1xf32, #tpu.memory_space<vmem>>, vector<1x32x1xf32>
    %cst_16 = arith.constant dense<0.000000e+00> : vector<32xf32>
    %28 = vector.multi_reduction <add>, %26, %cst_16 [1] : vector<32x256xf32> to vector<32xf32>
    %29 = vector.shape_cast %28 : vector<32xf32> to vector<32x1xf32>
    %30 = vector.shape_cast %29 : vector<32x1xf32> to vector<1x32x1xf32>
    %31 = arith.addf %27, %30 : vector<1x32x1xf32>
    %c0_17 = arith.constant 0 : index
    %c0_18 = arith.constant 0 : index
    %c0_19 = arith.constant 0 : index
    %32 = vector.load %arg6[%c0_17, %c0_18, %c0_19] : memref<1x32x1xf32, #tpu.memory_space<vmem>>, vector<1x32x1xf32>
    tpu.vector_store %arg6[%c0_17, %c0_18, %c0_19], %31 {strides = array<i32>} : memref<1x32x1xf32, #tpu.memory_space<vmem>>, vector<1x32x1xf32>,
    %c0_20 = arith.constant 0 : index
    %c0_21 = arith.constant 0 : index
    %c0_22 = arith.constant 0 : index
    %33 = vector.load %arg7[%c0_20, %c0_21, %c0_22] : memref<1x32x1xf32, #tpu.memory_space<vmem>>, vector<1x32x1xf32>
    %34 = arith.mulf %26, %26 : vector<32x256xf32>
    %cst_23 = arith.constant dense<0.000000e+00> : vector<32xf32>
    %35 = vector.multi_reduction <add>, %34, %cst_23 [1] : vector<32x256xf32> to vector<32xf32>
    %36 = vector.shape_cast %35 : vector<32xf32> to vector<32x1xf32>
    %37 = vector.shape_cast %36 : vector<32x1xf32> to vector<1x32x1xf32>
    %38 = arith.addf %33, %37 : vector<1x32x1xf32>
    %c0_24 = arith.constant 0 : index
    %c0_25 = arith.constant 0 : index
    %c0_26 = arith.constant 0 : index
    %39 = vector.load %arg7[%c0_24, %c0_25, %c0_26] : memref<1x32x1xf32, #tpu.memory_space<vmem>>, vector<1x32x1xf32>
    tpu.vector_store %arg7[%c0_24, %c0_25, %c0_26], %38 {strides = array<i32>} : memref<1x32x1xf32, #tpu.memory_space<vmem>>, vector<1x32x1xf32>,
    return
  }
  func.func @transform_0(%arg0: i32, %arg1: i32) -> (i32, i32, i32) {
    %c0_i32 = arith.constant 0 : i32
    %c0_i32_0 = arith.constant 0 : i32
    return %arg0, %c0_i32, %arg1 : i32, i32, i32
  }
  func.func @transform_1(%arg0: i32, %arg1: i32) -> (i32, i32) {
    %c0_i32 = arith.constant 0 : i32
    %c0_i32_0 = arith.constant 0 : i32
    %c0_i32_1 = arith.constant 0 : i32
    return %c0_i32, %c0_i32_0 : i32, i32
  }
  func.func @transform_2(%arg0: i32, %arg1: i32) -> (i32, i32) {
    %c0_i32 = arith.constant 0 : i32
    %c0_i32_0 = arith.constant 0 : i32
    %c0_i32_1 = arith.constant 0 : i32
    return %c0_i32, %c0_i32_0 : i32, i32
  }
  func.func @transform_3(%arg0: i32, %arg1: i32) -> (i32, i32) {
    %c0_i32 = arith.constant 0 : i32
    %c0_i32_0 = arith.constant 0 : i32
    %c0_i32_1 = arith.constant 0 : i32
    return %c0_i32, %c0_i32_0 : i32, i32
  }
  func.func @transform_4(%arg0: i32, %arg1: i32) -> (i32, i32, i32) {
    %c0_i32 = arith.constant 0 : i32
    %c0_i32_0 = arith.constant 0 : i32
    %c0_i32_1 = arith.constant 0 : i32
    return %arg0, %c0_i32, %c0_i32_0 : i32, i32, i32
  }
  func.func @transform_5(%arg0: i32, %arg1: i32) -> (i32, i32, i32) {
    %c0_i32 = arith.constant 0 : i32
    %c0_i32_0 = arith.constant 0 : i32
    %c0_i32_1 = arith.constant 0 : i32
    return %arg0, %c0_i32, %c0_i32_0 : i32, i32, i32
  }
}

</mosaic_0001>

<bundles_post_ra>
// kernel: pixel_discriminator_forward.3
= control target key start
LH: loop header
LB: loop body
LE: loop exit
PB: predicated region body
PF: predicated region fallthrough
CT: control target
= control target key end

     0   :  { %s758_s21 = smov 0   ;;  %s760_s22 = smov 0   ;;  %s839_s0 = inlined_call_operand.vmem [shape: f32[2,4,256], index: 0, kind: input, shape index: {}]   ;;  %s840_s1 = inlined_call_operand.vmem [shape: bf16[16,4], index: 1, kind: input, shape index: {}]   ;;  %s841_s2 = inlined_call_operand.vmem [shape: f32[16,1], index: 2, kind: input, shape index: {}]   ;;  %s842_s3 = inlined_call_operand.vmem [shape: bf16[32,16], index: 3, kind: input, shape index: {}]   ;;  %s843_s4 = inlined_call_operand.vmem [shape: f32[32,1], index: 4, kind: input, shape index: {}]   ;;  %s844_s5 = inlined_call_operand.vmem [shape: f32[32,1], index: 5, kind: input, shape index: {}]   ;;  %s845_s6 = inlined_call_operand.vmem [shape: f32[2,1,256], index: 6, kind: output, shape index: {}]  }
   0x1   :  { %s762_s23 = smov 0  }
   0x2 LB: > { %s28_s24 = sadd.s32 1, %s715_s22  ;;  %p651_p0 = scmp.ge.s32.totalorder %s719_s23, 1  ;;  %s719_s23 = sphi %s762_s23, %s16_s23   ;;  %s715_s22 = sphi %s760_s22, %s847_s22   ;;  %s711_s21 = sphi %s758_s21, %s846_s21  }
   0x3   : > { %p30_p1 = scmp.ge.s32.totalorder %s28_s24, 2  ;;  %p233_p2 = scmp.lt.s32.totalorder %s719_s23, 3 }
   0x5   : > { %s849_s24 = smov (%p30_p1, %s28_s24), 0  ;;  %p234_p3 = pnand %p651_p0, %p233_p2 }
   0x6   : > { %p271_p4 = scmp.lt.s32.totalorder (!%p234_p3), %s711_s21, 1  ;;  %v721_v0 = vmov (!%p234_p3), 0   ;;  %v298_v1 = vld [vmem:[%s841_s2] sm:$0xff] (!%p234_p3)  ;;  %v299_v2 = vld [vmem:[%s841_s2 + $0x8] sm:$0xff] (!%p234_p3)  ;;  %vm319_vm0 = vcmask (!%p234_p3), 1041408   ;;  %v385_v6 = vld [vmem:[%s843_s4 + $0x10] sm:$0xff] (!%p234_p3) }
   0x7   : > { %237 = sbr.rel (%p234_p3) target bundleno = 505 (0x1f9), region = 44  ;;  %358 = vmatprep.mubr.bf16.mxu0 (!%p234_p3), %v721_v0  ;;  %691 = vset.pattern.permute.xlu0 (!%p234_p3), %v721_v0  ;;  %v694_v9 = vld [vmem:[%s840_s1] sm:$0xff] (!%p234_p3)   ;;  %vm315_vm1 = vcmask (!%p234_p3), 31744   ;;  %v495_v11 = vld [vmem:[%s844_s5 + $0x10] sm:$0xff] (!%p234_p3)  ;;  %v384_v13 = vld [vmem:[%s843_s4 + $0x8] sm:$0xff] (!%p234_p3)  ;;  %vm417_vm2 = vcmask (!%p234_p3), 130048  }
   0x8   : > { %302 = vperm.xlu0 (!%p234_p3), %691, %v298_v1   ;;  %456 = vmatprep.mubr.bf16.mxu1 (!%p234_p3), %v721_v0  ;;  %v493_v10 = vld [vmem:[%s844_s5] sm:$0xff] (!%p234_p3)  ;;  %v386_v14 = vld [vmem:[%s843_s4 + $0x18] sm:$0xff] (!%p234_p3)  ;;  %v494_v15 = vld [vmem:[%s844_s5 + $0x8] sm:$0xff] (!%p234_p3) }
   0x9   : > { %692 = vset.pattern.permute.xlu1 (!%p234_p3), %v721_v0  ;;  %v383_v12 = vld [vmem:[%s843_s4] sm:$0xff] (!%p234_p3)  ;;  %v496_v16 = vld [vmem:[%s844_s5 + $0x18] sm:$0xff] (!%p234_p3)  ;;  %v696_v38 = vld [vmem:[%s842_s3 + $0x8] sm:$0xff] (!%p234_p3)  }
   0xa   : > { %389 = vperm.xlu1 (!%p234_p3), %692, %v383_v12   ;;  %v695_v37 = vld [vmem:[%s842_s3] sm:$0xff] (!%p234_p3)  }
   0xc   : > { %307 = vperm.xlu0 (!%p234_p3), %691, %v299_v2  }
   0xe   : > { %s851_s21 = smov (!%p271_p4, %s711_s21), 1  ;;  %394 = vperm.xlu1 %692, %v384_v13  }
   0xf   : > { %s664_s29 = sshll.u32 %s851_s21, 3  ;;  %s654_s11 = sshll.u32 %s851_s21, 1 }
  0x10   : > { %s278_s8 = scalar_lea.vmem %s839_s0, %s664_s29  ;;  %399 = vperm.xlu0 %691, %v385_v6   ;;  %s287_s14 = scalar_lea.vmem %s845_s6, %s654_s11 }
  0x11   : > { %v290_v3 = vld [vmem:[%s278_s8] sm:$0xff] }
  0x12   : > { %v292_v4 = vcombine.high %v290_v3, %v290_v3  ;;  %v294_v5 = vpack.c.bf16 %v290_v3, %v290_v3  ;;  %404 = vperm.xlu1 %692, %v386_v14  }
  0x14   : > { %v295_v7 = vpack.c.bf16 %v292_v4, %v292_v4  ;;  %v321_v8 = vsel %vm319_vm0, %v294_v5, 0  ;;  %499 = vperm.xlu0 %691, %v493_v10  }
  0x16   : > { %656 = vmatprep.subr.msk.bf16.mxu0 %vm319_vm0, %v295_v7  ;;  %504 = vperm.xlu1 %692, %v494_v15  }
  0x17   : > { %327 = vmatpush1.bf16.msra.mxu0 %v321_v8 }
  0x18   : > { %509 = vperm.xlu0 %691, %v495_v11  }
  0x1a   : > { %657 = vmatmul.mubr.msk.bf16.vlgmr.msra.gmra.mrb[0].mxu0 %vm315_vm1, %v694_v9  ;;  %514 = vperm.xlu1 %692, %v496_v16  }
  0x87   : > { %v303_v17 = vpop.permute.xlu0 %302 }
  0x89   : > { %v390_v39 = vpop.permute.xlu1 %389 }
  0x8b   : > { %v308_v21 = vpop.permute.xlu0 %307 }
  0x8d   : > { %v395_v40 = vpop.permute.xlu1 %394 }
  0x8f   : > { %v400_v42 = vpop.permute.xlu0 %399 }
  0x91   : > { %v405_v45 = vpop.permute.xlu1 %404 }
  0x93   : > { %v500_v57 = vpop.permute.xlu0 %499 }
  0x95   : > { %v505_v59 = vpop.permute.xlu1 %504 }
  0x97   : > { %v510_v15 = vpop.permute.xlu0 %509 }
  0xed   : > { %v360_v18 = vpop.f32.mrb[0].mxu0 }
  0xee   : > { %v361_v19 = vadd.f32 %v360_v18, %v303_v17  ;;  %v362_v20 = vpop.f32.mrb[1].mxu0 }
  0xef   : > { %v363_v22 = vadd.f32 %v362_v20, %v303_v17  ;;  %v364_v23 = vpop.f32.mrb[2].mxu0  ;;  %v515_v20 = vpop.permute.xlu1 %514 }
  0xf0   : > { %v369_v24 = vmul.f32 0.2, %v361_v19  ;;  %v365_v25 = vadd.f32 %v364_v23, %v308_v21  ;;  %v366_v26 = vpop.f32.mrb[3].mxu0 }
  0xf1   : > { %v370_v27 = vmul.f32 0.2, %v363_v22  ;;  %v367_v28 = vadd.f32 %v366_v26, %v308_v21 }
  0xf2   : > { %v371_v29 = vmul.f32 0.2, %v365_v25  ;;  %v373_v31 = vmax.f32 %v361_v19, %v369_v24 }
  0xf3   : > { %v372_v30 = vmul.f32 0.2, %v367_v28  ;;  %v374_v33 = vmax.f32 %v363_v22, %v370_v27 }
  0xf4   : > { %v375_v32 = vmax.f32 %v365_v25, %v371_v29 }
  0xf5   : > { %v376_v34 = vmax.f32 %v367_v28, %v372_v30 }
  0xf6   : > { %v381_v35 = vpack.c.bf16 %v375_v32, %v373_v31 }
  0xf7   : > { %v382_v36 = vpack.c.bf16 %v376_v34, %v374_v33  ;;  %v722_v33 = vmov 1966171168  }
  0xf8   : > { %v547_v34 = vunpack.c.l.s4 %v722_v33 }
  0xf9   : > { %424 = vmatprep.subr.bf16.mxu1 %v382_v36 }
  0xfa   : > { %425 = vmatpush1.bf16.msra.mxu1 %v381_v35  ;;  %v549_v35 = vlaneseq }
  0xfc   : > { %vm563_vm3 = vcmp.lt.s32.totalorder %v549_v35, 256 }
  0xfd   : > { %660 = vmatmul.mubr.msk.bf16.vlgmr.msra.gmra.mrb[0].mxu1 %vm417_vm2, %v695_v37 }
  0xfe   : > { %466 = vmatprep.mubr.bf16.mxu1 %v721_v0 }
 0x105   : > { %661 = vmatmul.mubr.msk.bf16.gmra.mrb[4].mxu1 %vm417_vm2, %v696_v38 }
 0x1d0   : > { %v458_v41 = vpop.f32.mrb[0].mxu1 }
 0x1d1   : > { %v459_v43 = vadd.f32 %v458_v41, %v390_v39  ;;  %v460_v44 = vpop.f32.mrb[1].mxu1  ;;  %v550_v41 = vshrl.u32 %v549_v35, 7 }
 0x1d2   : > { %v461_v46 = vadd.f32 %v460_v44, %v390_v39  ;;  %v462_v47 = vpop.f32.mrb[2].mxu1 }
 0x1d3   : > { %v477_v48 = vmul.f32 0.2, %v459_v43  ;;  %v463_v49 = vadd.f32 %v462_v47, %v395_v40  ;;  %v464_v50 = vpop.f32.mrb[3].mxu1 }
 0x1d4   : > { %v478_v51 = vmul.f32 0.2, %v461_v46  ;;  %v465_v52 = vadd.f32 %v464_v50, %v395_v40  ;;  %v548_v40 = vunpack.c.0.s8 %v547_v34 }
 0x1d5   : > { %v485_v53 = vmax.f32 %v459_v43, %v477_v48  ;;  %v479_v54 = vmul.f32 0.2, %v463_v49 }
 0x1d6   : > { %v486_v55 = vmax.f32 %v461_v46, %v478_v51  ;;  %v480_v56 = vmul.f32 0.2, %v465_v52  ;;  %v551_v46 = vsub.s32 %v548_v40, %v550_v41 }
 0x1d7   : > { %v487_v58 = vmax.f32 %v463_v49, %v479_v54  ;;  %v517_v62 = vmul.f32 %v500_v57, %v485_v53 }
 0x1d8   : > { %v488_v60 = vmax.f32 %v465_v52, %v480_v56  ;;  %v468_v61 = vpop.f32.mrb[4].mxu1  ;;  %v518_v2 = vmul.f32 %v500_v57, %v486_v55 }
 0x1d9   : > { %v519_v63 = vmul.f32 %v505_v59, %v487_v58  ;;  %v469_v0 = vadd.f32 %v468_v61, %v400_v42  ;;  %v470_v1 = vpop.f32.mrb[5].mxu1 }
 0x1da   : > { %v520_v3 = vmul.f32 %v505_v59, %v488_v60  ;;  %v471_v4 = vadd.f32 %v470_v1, %v400_v42  ;;  %v472_v5 = vpop.f32.mrb[6].mxu1 }
 0x1db   : > { %v525_v6 = vadd.f32 %v519_v63, %v517_v62  ;;  %v481_v7 = vmul.f32 0.2, %v469_v0  ;;  %v473_v8 = vadd.f32 %v472_v5, %v405_v45  ;;  %v474_v9 = vpop.f32.mrb[7].mxu1 }
 0x1dc   : > { %v534_v10 = vadd.f32 %v520_v3, %v518_v2  ;;  %v482_v11 = vmul.f32 0.2, %v471_v4  ;;  %v475_v12 = vadd.f32 %v474_v9, %v405_v45 }
 0x1dd   : > { %v489_v13 = vmax.f32 %v469_v0, %v481_v7  ;;  %v483_v14 = vmul.f32 0.2, %v473_v8 }
 0x1de   : > { %v490_v16 = vmax.f32 %v471_v4, %v482_v11  ;;  %v484_v17 = vmul.f32 0.2, %v475_v12 }
 0x1df   : > { %v521_v18 = vmul.f32 %v510_v15, %v489_v13  ;;  %v491_v19 = vmax.f32 %v473_v8, %v483_v14 }
 0x1e0   : > { %v522_v21 = vmul.f32 %v510_v15, %v490_v16  ;;  %v492_v22 = vmax.f32 %v475_v12, %v484_v17 }
 0x1e1   : > { %v526_v23 = vadd.f32 %v525_v6, %v521_v18  ;;  %v523_v24 = vmul.f32 %v515_v20, %v491_v19 }
 0x1e2   : > { %v535_v25 = vadd.f32 %v534_v10, %v522_v21  ;;  %v524_v26 = vmul.f32 %v515_v20, %v492_v22 }
 0x1e3   : > { %v527_v27 = vadd.f32 %v526_v23, %v523_v24 }
 0x1e4   : > { %v536_v28 = vadd.f32 %v535_v25, %v524_v26 }
 0x1e5   : > { %v528_v29 = vrot.slane %v527_v27, 4 }
 0x1e6   : > { %v537_v30 = vrot.slane %v536_v28, 4 }
 0x1e7   : > { %v529_v31 = vadd.f32 %v528_v29, %v527_v27 }
 0x1e8   : > { %v538_v32 = vadd.f32 %v537_v30, %v536_v28 }
 0x1e9   : > { %v530_v36 = vrot.slane %v529_v31, 2 }
 0x1ea   : > { %v539_v37 = vrot.slane %v538_v32, 2 }
 0x1eb   : > { %v531_v38 = vadd.f32 %v530_v36, %v529_v31 }
 0x1ec   : > { %v540_v39 = vadd.f32 %v539_v37, %v538_v32 }
 0x1ed   : > { %v532_v42 = vrot.slane %v531_v38, 1 }
 0x1ee   : > { %v541_v43 = vrot.slane %v540_v39, 1 }
 0x1ef   : > { %v533_v44 = vadd.f32 %v532_v42, %v531_v38 }
 0x1f0   : > { %v542_v45 = vadd.f32 %v541_v43, %v540_v39 }
 0x1f2   : > { %v545_v47 = vcombine.low %v533_v44, %v542_v45 }
 0x1f4   : > { %v552_v48 = vrot.slane %v545_v47, %v551_v46 }
 0x1f6   : > { %v559_v49 = vrot.slane %v552_v48, %v551_v46 }
 0x1f8   : > { %565 = vst.msk [vmem:[%s287_s14] sm:$0x3] %vm563_vm3, %v559_v49 }
 0x1f9 PF: > { %s16_s23 = sadd.s32 1, %s719_s23   ;;  %s846_s21 = smov %s715_s22 }
 0x1fa   : > { %p13_p5 = scmp.ge.s32.totalorder %s16_s23, 4   ;;  %s847_s22 = smov %s849_s24 }
 0x1fc   :  { %15 = sbr.rel (!%p13_p5) target bundleno = 2 (0x2), region = 74 }

// kernel: pixel_discriminator_forward.2
= control target key start
LH: loop header
LB: loop body
LE: loop exit
PB: predicated region body
PF: predicated region fallthrough
CT: control target
= control target key end

     0   :  { %s733_s18 = smov 0   ;;  %s735_s19 = smov 0   ;;  %s832_s0 = inlined_call_operand.vmem [shape: f32[2,4,256], index: 0, kind: input, shape index: {}]   ;;  %s833_s1 = inlined_call_operand.vmem [shape: bf16[16,4], index: 1, kind: input, shape index: {}]   ;;  %s834_s2 = inlined_call_operand.vmem [shape: f32[16,1], index: 2, kind: input, shape index: {}]   ;;  %s835_s3 = inlined_call_operand.vmem [shape: bf16[32,16], index: 3, kind: input, shape index: {}]   ;;  %s836_s4 = inlined_call_operand.vmem [shape: f32[2,32,1], index: 4, kind: output, shape index: {0}]   ;;  %s837_s5 = inlined_call_operand.vmem [shape: f32[2,32,1], index: 5, kind: output, shape index: {1}]  }
   0x1   :  { %s737_s20 = smov 0  }
   0x2 LB: > { %s28_s21 = sadd.s32 1, %s695_s19  ;;  %p627_p0 = scmp.ge.s32.totalorder %s699_s20, 1  ;;  %s699_s20 = sphi %s737_s20, %s16_s20   ;;  %s695_s19 = sphi %s735_s19, %s839_s19   ;;  %s691_s18 = sphi %s733_s18, %s838_s18  }
   0x3   : > { %p30_p1 = scmp.ge.s32.totalorder %s28_s21, 2  ;;  %p209_p2 = scmp.lt.s32.totalorder %s699_s20, 3 }
   0x5   : > { %s841_s21 = smov (%p30_p1, %s28_s21), 0  ;;  %p210_p3 = pnand %p627_p0, %p209_p2 }
   0x6   : > { %p247_p4 = scmp.lt.s32.totalorder (!%p210_p3), %s691_s18, 1  ;;  %v701_v0 = vmov (!%p210_p3), 0   ;;  %v288_v1 = vld [vmem:[%s834_s2] sm:$0xff] (!%p210_p3)  ;;  %v289_v2 = vld [vmem:[%s834_s2 + $0x8] sm:$0xff] (!%p210_p3)  ;;  %vm309_vm0 = vcmask (!%p210_p3), 1041408   ;;  %vm305_vm1 = vcmask (!%p210_p3), 31744  }
   0x7   : > { %213 = sbr.rel (%p210_p3) target bundleno = 637 (0x27d), region = 36  ;;  %348 = vmatprep.mubr.bf16.mxu0 (!%p210_p3), %v701_v0  ;;  %672 = vset.pattern.permute.xlu0 (!%p210_p3), %v701_v0  ;;  %v674_v8 = vld [vmem:[%s833_s1] sm:$0xff] (!%p210_p3)   ;;  %vm383_vm2 = vcmask (!%p210_p3), 130048   ;;  %v676_v30 = vld [vmem:[%s835_s3 + $0x8] sm:$0xff] (!%p210_p3)   ;;  %vm271_vm3 = vcmask (!%p210_p3), 7168   ;;  %v702_v31 = vmov (!%p210_p3), 0.0  }
   0x8   : > { %292 = vperm.xlu0 (!%p210_p3), %672, %v288_v1   ;;  %422 = vmatprep.mubr.bf16.mxu1 (!%p210_p3), %v701_v0  ;;  %v675_v29 = vld [vmem:[%s835_s3] sm:$0xff] (!%p210_p3)  }
   0xc   : > { %297 = vperm.xlu0 (!%p210_p3), %672, %v289_v2  }
   0xe   : > { %s843_s18 = smov (!%p247_p4, %s691_s18), 1 }
   0xf   : > { %s643_s26 = sshll.u32 %s843_s18, 3  ;;  %s644_s11 = sshll.u32 %s843_s18, 5 }
  0x10   : > { %s254_s29 = scalar_lea.vmem %s832_s0, %s643_s26  ;;  %s776_s14 = scalar_lea.vmem %s836_s4, %s644_s11 }
  0x11   : > { %v280_v3 = vld [vmem:[%s254_s29] sm:$0xff]  ;;  %s781_s17 = scalar_lea.vmem %s837_s5, %s644_s11  ;;  %272 = vst.msk [vmem:[%s776_s14] sm:$0xff] %vm271_vm3, %v702_v31  ;;  %273 = vst.msk [vmem:[%s776_s14 + $0x8] sm:$0xff] %vm271_vm3, %v702_v31 }
  0x12   : > { %v282_v4 = vcombine.high %v280_v3, %v280_v3  ;;  %v284_v5 = vpack.c.bf16 %v280_v3, %v280_v3  ;;  %274 = vst.msk [vmem:[%s776_s14 + $0x10] sm:$0xff] %vm271_vm3, %v702_v31  ;;  %275 = vst.msk [vmem:[%s776_s14 + $0x18] sm:$0xff] %vm271_vm3, %v702_v31 }
  0x13   : > { %276 = vst.msk [vmem:[%s781_s17] sm:$0xff] %vm271_vm3, %v702_v31  ;;  %277 = vst.msk [vmem:[%s781_s17 + $0x8] sm:$0xff] %vm271_vm3, %v702_v31 }
  0x14   : > { %v285_v6 = vpack.c.bf16 %v282_v4, %v282_v4  ;;  %v311_v7 = vsel %vm309_vm0, %v284_v5, 0  ;;  %278 = vst.msk [vmem:[%s781_s17 + $0x10] sm:$0xff] %vm271_vm3, %v702_v31  ;;  %279 = vst.msk [vmem:[%s781_s17 + $0x18] sm:$0xff] %vm271_vm3, %v702_v31 }
  0x16   : > { %635 = vmatprep.subr.msk.bf16.mxu0 %vm309_vm0, %v285_v6 }
  0x17   : > { %317 = vmatpush1.bf16.msra.mxu0 %v311_v7 }
  0x18   : > { %v464_v56 = vld [vmem:[%s776_s14] sm:$0xff]  ;;  %v465_v59 = vld [vmem:[%s776_s14 + $0x8] sm:$0xff] }
  0x19   : > { %v466_v63 = vld [vmem:[%s776_s14 + $0x10] sm:$0xff]  ;;  %v467_v7 = vld [vmem:[%s776_s14 + $0x18] sm:$0xff] }
  0x1a   : > { %636 = vmatmul.mubr.msk.bf16.vlgmr.msra.gmra.mrb[0].mxu0 %vm305_vm1, %v674_v8  ;;  %v489_v62 = vld [vmem:[%s781_s17] sm:$0xff]  ;;  %v490_v4 = vld [vmem:[%s781_s17 + $0x8] sm:$0xff] }
  0x87   : > { %v293_v9 = vpop.permute.xlu0 %292 }
  0x8b   : > { %v298_v13 = vpop.permute.xlu0 %297 }
  0xed   : > { %v350_v10 = vpop.f32.mrb[0].mxu0 }
  0xee   : > { %v351_v11 = vadd.f32 %v350_v10, %v293_v9  ;;  %v352_v12 = vpop.f32.mrb[1].mxu0  ;;  %v491_v10 = vld [vmem:[%s781_s17 + $0x10] sm:$0xff] }
  0xef   : > { %v353_v14 = vadd.f32 %v352_v12, %v293_v9  ;;  %v354_v15 = vpop.f32.mrb[2].mxu0 }
  0xf0   : > { %v359_v16 = vmul.f32 0.2, %v351_v11  ;;  %v355_v17 = vadd.f32 %v354_v15, %v298_v13  ;;  %v356_v18 = vpop.f32.mrb[3].mxu0 }
  0xf1   : > { %v360_v19 = vmul.f32 0.2, %v353_v14  ;;  %v357_v20 = vadd.f32 %v356_v18, %v298_v13  ;;  %v492_v13 = vld [vmem:[%s781_s17 + $0x18] sm:$0xff] }
  0xf2   : > { %v361_v21 = vmul.f32 0.2, %v355_v17  ;;  %v363_v23 = vmax.f32 %v351_v11, %v359_v16 }
  0xf3   : > { %v362_v22 = vmul.f32 0.2, %v357_v20  ;;  %v364_v25 = vmax.f32 %v353_v14, %v360_v19 }
  0xf4   : > { %v365_v24 = vmax.f32 %v355_v17, %v361_v21 }
  0xf5   : > { %v366_v26 = vmax.f32 %v357_v20, %v362_v22 }
  0xf6   : > { %v371_v27 = vpack.c.bf16 %v365_v24, %v363_v23 }
  0xf7   : > { %v372_v28 = vpack.c.bf16 %v366_v26, %v364_v25 }
  0xf9   : > { %390 = vmatprep.subr.bf16.mxu1 %v372_v28 }
  0xfa   : > { %391 = vmatpush1.bf16.msra.mxu1 %v371_v27 }
  0xfd   : > { %639 = vmatmul.mubr.msk.bf16.vlgmr.msra.gmra.mrb[0].mxu1 %vm383_vm2, %v675_v29 }
  0xfe   : > { %432 = vmatprep.mubr.bf16.mxu1 %v701_v0 }
 0x105   : > { %640 = vmatmul.mubr.msk.bf16.gmra.mrb[4].mxu1 %vm383_vm2, %v676_v30 }
 0x1d0   : > { %v424_v32 = vpop.f32.mrb[0].mxu1 }
 0x1d1   : > { %v493_v33 = vmul.f32 %v424_v32, %v424_v32  ;;  %v426_v34 = vpop.f32.mrb[1].mxu1 }
 0x1d2   : > { %v494_v35 = vmul.f32 %v426_v34, %v426_v34  ;;  %v428_v36 = vpop.f32.mrb[2].mxu1  ;;  %v468_v37 = vadd.f32 %v426_v34, %v424_v32 }
 0x1d3   : > { %v495_v38 = vmul.f32 %v428_v36, %v428_v36  ;;  %v430_v39 = vpop.f32.mrb[3].mxu1 }
 0x1d4   : > { %v496_v40 = vmul.f32 %v430_v39, %v430_v39  ;;  %469 = vadd.xlane.f32.xlu1 %v468_v37  ;;  %v471_v41 = vadd.f32 %v430_v39, %v428_v36  ;;  %v501_v42 = vadd.f32 %v494_v35, %v493_v33 }
 0x1d6   : > { %v504_v43 = vadd.f32 %v496_v40, %v495_v38 }
 0x1d8   : > { %472 = vadd.xlane.f32.xlu1 %v471_v41  ;;  %v434_v44 = vpop.f32.mrb[4].mxu1 }
 0x1d9   : > { %v497_v45 = vmul.f32 %v434_v44, %v434_v44  ;;  %v436_v46 = vpop.f32.mrb[5].mxu1 }
 0x1da   : > { %v498_v47 = vmul.f32 %v436_v46, %v436_v46  ;;  %v438_v48 = vpop.f32.mrb[6].mxu1  ;;  %v474_v49 = vadd.f32 %v436_v46, %v434_v44 }
 0x1db   : > { %v499_v50 = vmul.f32 %v438_v48, %v438_v48  ;;  %v440_v51 = vpop.f32.mrb[7].mxu1 }
 0x1dc   : > { %502 = vadd.xlane.f32.xlu1 %v501_v42  ;;  %v477_v52 = vadd.f32 %v440_v51, %v438_v48  ;;  %v500_v53 = vmul.f32 %v440_v51, %v440_v51  ;;  %475 = vadd.xlane.f32.xlu0 %v474_v49  ;;  %v507_v54 = vadd.f32 %v498_v47, %v497_v45 }
 0x1de   : > { %v510_v55 = vadd.f32 %v500_v53, %v499_v50 }
 0x1e0   : > { %505 = vadd.xlane.f32.xlu1 %v504_v43 }
 0x1e4   : > { %478 = vadd.xlane.f32.xlu1 %v477_v52 }
 0x1e8   : > { %508 = vadd.xlane.f32.xlu1 %v507_v54 }
 0x1ec   : > { %511 = vadd.xlane.f32.xlu1 %v510_v55 }
 0x261   : > { %v470_v57 = vpop.xlane.xlu1 %469 }
 0x262   : > { %v480_v58 = vadd.f32 %v470_v57, %v464_v56 }
 0x264   : > { %485 = vst.msk [vmem:[%s776_s14] sm:$0xff] %vm271_vm3, %v480_v58 }
 0x265   : > { %v473_v60 = vpop.xlane.xlu1 %472 }
 0x266   : > { %v481_v61 = vadd.f32 %v473_v60, %v465_v59 }
 0x268   : > { %486 = vst.msk [vmem:[%s776_s14 + $0x8] sm:$0xff] %vm271_vm3, %v481_v61 }
 0x269   : > { %v503_v0 = vpop.xlane.xlu1 %502  ;;  %v476_v1 = vpop.xlane.xlu0 %475 }
 0x26a   : > { %v513_v2 = vadd.f32 %v503_v0, %v489_v62  ;;  %v482_v3 = vadd.f32 %v476_v1, %v466_v63 }
 0x26c   : > { %517 = vst.msk [vmem:[%s781_s17] sm:$0xff] %vm271_vm3, %v513_v2  ;;  %487 = vst.msk [vmem:[%s776_s14 + $0x10] sm:$0xff] %vm271_vm3, %v482_v3 }
 0x26d   : > { %v506_v5 = vpop.xlane.xlu1 %505 }
 0x26e   : > { %v514_v6 = vadd.f32 %v506_v5, %v490_v4 }
 0x270   : > { %518 = vst.msk [vmem:[%s781_s17 + $0x8] sm:$0xff] %vm271_vm3, %v514_v6 }
 0x271   : > { %v479_v8 = vpop.xlane.xlu1 %478 }
 0x272   : > { %v483_v9 = vadd.f32 %v479_v8, %v467_v7 }
 0x274   : > { %488 = vst.msk [vmem:[%s776_s14 + $0x18] sm:$0xff] %vm271_vm3, %v483_v9 }
 0x275   : > { %v509_v11 = vpop.xlane.xlu1 %508 }
 0x276   : > { %v515_v12 = vadd.f32 %v509_v11, %v491_v10 }
 0x278   : > { %519 = vst.msk [vmem:[%s781_s17 + $0x10] sm:$0xff] %vm271_vm3, %v515_v12 }
 0x279   : > { %v512_v14 = vpop.xlane.xlu1 %511 }
 0x27a   : > { %v516_v15 = vadd.f32 %v512_v14, %v492_v13 }
 0x27c   : > { %520 = vst.msk [vmem:[%s781_s17 + $0x18] sm:$0xff] %vm271_vm3, %v516_v15 }
 0x27d PF: > { %s16_s20 = sadd.s32 1, %s699_s20   ;;  %s838_s18 = smov %s695_s19 }
 0x27e   : > { %p13_p5 = scmp.ge.s32.totalorder %s16_s20, 4   ;;  %s839_s19 = smov %s841_s21 }
 0x280   :  { %15 = sbr.rel (!%p13_p5) target bundleno = 2 (0x2), region = 82 }

</bundles_post_ra>
